<compile_context>
chip_gen: v7x
topology: tpu7x:2x2x1
jax: 0.10.0
libtpu: 0.0.40
codegen_flags: <defaults>
</compile_context>

<pallas_src>
import jax
import jax.numpy as jnp
from jax.experimental import pallas as pl
from jax.experimental.pallas import tpu as pltpu

N = 161          # node count, fixed by the module's 161x161 Parameter
LANE_TILE = 128  # lane-dense chunk of the folded (N, B*F) feature slab


def _generator_conv_kernel(c_ref, p_ref, ts_ref, x_ref, out_ref):
    """One lane-chunk of the batched feature slab.

    c_ref : (N, N)  f32  precomputed 0/1 mask C = (T > 0.3)      (resident)
    p_ref : (N, N)  f32  learned parameter P                     (resident)
    ts_ref: (N, N)  bf16 precomputed Ts = (D^{-1} A)^T            (resident)
    x_ref : (N, TL) f32  lane chunk of the folded (N, B*F) slab
    out_ref:(N, TL) f32
    """
    x = x_ref[...]                                               # (N, TL) f32

    # Ts @ x : standard (M,K)x(K,N) MXU matmul; Ts is already normalized and
    # pre-transposed in the wrapper, so no in-kernel XLU transpose.
    tsx = jnp.dot(ts_ref[...], x.astype(jnp.bfloat16),
                  preferred_element_type=jnp.float32)            # (N, TL) f32

    # M = R * (C * P_thresholded) = 0.5 * (C * (P > 0.5) * P), built directly
    # in bf16 with a single select. (Recomputed per 128-lane chunk; this is
    # <1% of the matmul work.)
    M = jnp.where((c_ref[...] > 0.5) & (p_ref[...] > 0.5),
                  (0.5 * p_ref[...]).astype(jnp.bfloat16),
                  jnp.bfloat16(0.0))                             # (N, N) bf16

    # delta_H = R @ Hr = M @ (Ts @ x)
    delta = jnp.dot(M, tsx.astype(jnp.bfloat16),
                    preferred_element_type=jnp.float32)          # (N, TL) f32

    out_ref[...] = x + delta


def precompute_adjacency(A):
    """A-only preprocessing, hoisted out of the hot kernel (A is static).

    Returns:
      Ts : (N, N) bf16  = (D^{-1} A)^T, pre-transposed LHS for the MXU
      C  : (N, N) f32   = 0/1 mask (T > 0.3)
    """
    # TODO(synk): set_T / set_Ts / set_C sources unavailable; placeholder
    # semantics (row-normalize, transpose, threshold 0.3) used here.
    rowsum = jnp.sum(A, axis=1, keepdims=True)
    nz = rowsum > 0.0
    inv = jnp.where(nz, 1.0 / jnp.where(nz, rowsum, 1.0), 0.0)   # exact divide
    T = inv * A
    Ts = jnp.transpose(T).astype(jnp.bfloat16)
    C = (T > 0.3).astype(jnp.float32)
    return Ts, C


def generator_conv_forward(x, P, Ts, C, *, lane_tile=LANE_TILE):
    """Batched forward. x: (B, N, F) or (N, F) f32 -> new_H, same shape."""
    squeeze = (x.ndim == 2)
    if squeeze:
        x = x[None]
    B, n, F = x.shape
    assert P.shape == (n, n) and Ts.shape == (n, n) and C.shape == (n, n)

    # Fold batch into the trailing (lane) axis -> one lane-dense (N, B*F) slab.
    X = jnp.transpose(x, (1, 0, 2)).reshape(n, B * F).astype(jnp.float32)
    L = B * F
    L_pad = ((L + lane_tile - 1) // lane_tile) * lane_tile
    if L_pad != L:
        X = jnp.pad(X, ((0, 0), (0, L_pad - L)))   # zero lanes -> zero output

    grid = (L_pad // lane_tile,)
    flops = 4 * n * n * L_pad                       # two (N,N)x(N,TL) matmuls
    bytes_accessed = (2 * n * n * 4                 # C, P (f32)
                      + n * n * 2                   # Ts (bf16)
                      + 2 * n * L_pad * 4)          # X in + out

    out = pl.pallas_call(
        _generator_conv_kernel,
        out_shape=jax.ShapeDtypeStruct((n, L_pad), jnp.float32),
        grid=grid,
        in_specs=[
            pl.BlockSpec((n, n), lambda j: (0, 0)),           # C  (resident)
            pl.BlockSpec((n, n), lambda j: (0, 0)),           # P  (resident)
            pl.BlockSpec((n, n), lambda j: (0, 0)),           # Ts (resident)
            pl.BlockSpec((n, lane_tile), lambda j: (0, j)),   # X lane chunk
        ],
        out_specs=pl.BlockSpec((n, lane_tile), lambda j: (0, j)),
        compiler_params=pltpu.CompilerParams(
            dimension_semantics=("parallel",)),               # v7x: 2 TCs
        cost_estimate=pl.CostEstimate(
            flops=flops, transcendentals=0, bytes_accessed=bytes_accessed),
    )(C, P.astype(jnp.float32), Ts, X)

    out = out[:, :L].reshape(n, B, F).transpose(1, 0, 2)
    if squeeze:
        out = out[0]
    return out


def init_P(key):
    """self.P: zeros(161,161) with P[116:161, 0:116] ~ U[0,1)."""
    P = jnp.zeros((N, N), jnp.float32)
    P = P.at[116:161, 0:116].set(
        jax.random.uniform(key, (45, 116), jnp.float32))
    # TODO(synk): self.linear (Linear(45*45 -> 116*45), Linear(116*45 ->
    # 116*116)) and set_weight(new_H) are never used by forward(); their
    # (~280 MB) weights are intentionally not materialized.
    return P


def _reference(x, A, P):
    """Pure-JAX reference of the same placeholder semantics (f32)."""
    rowsum = jnp.sum(A, axis=1, keepdims=True)
    nz = rowsum > 0.0
    inv = jnp.where(nz, 1.0 / jnp.where(nz, rowsum, 1.0), 0.0)
    T = inv * A
    Ts = T.T
    C = (T > 0.3).astype(jnp.float32)
    Pe = jnp.where(P > 0.5, P, 0.0)
    M = 0.5 * C * Pe
    return x + jnp.einsum('ij,jk,bkf->bif', M, Ts, x)


if __name__ == "__main__":
    key = jax.random.PRNGKey(0)
    k_P, k_A, k_x = jax.random.split(key, 3)

    P = init_P(k_P)

    B, F = 8, 32   # B*F = 256 lanes -> 2 lane-dense grid steps (1 per v7x TC)
    A_raw = jax.random.uniform(k_A, (N, N), jnp.float32)
    A = jnp.where(0.5 * (A_raw + A_raw.T) > 0.97, 1.0, 0.0)  # sparse symmetric
    A = A + jnp.eye(N, dtype=jnp.float32)                    # no empty rows
    x = jax.random.normal(k_x, (B, N, F), jnp.float32)

    Ts, C = precompute_adjacency(A)          # A-static work, done exactly once
    new_H = generator_conv_forward(x, P, Ts, C)
    new_H = jax.block_until_ready(new_H)

    assert new_H.shape == (B, N, F)
    assert new_H.dtype == jnp.float32
    assert bool(jnp.all(jnp.isfinite(new_H)))

    ref = _reference(x, A, P)
    assert bool(jnp.max(jnp.abs(new_H - ref)) < 5e-2), "mismatch vs reference"
    print("KERNEL_OK")
</pallas_src>

<mosaic_0001>
module attributes {stable_mosaic.version = 11 : i64} {
  func.func @_generator_conv_kernel(%arg0: i32, %arg1: memref<161x161xf32, #tpu.memory_space<vmem>>, %arg2: memref<161x161xf32, #tpu.memory_space<vmem>>, %arg3: memref<161x161xbf16, #tpu.memory_space<vmem>>, %arg4: memref<161x128xf32, #tpu.memory_space<vmem>>, %arg5: memref<161x128xf32, #tpu.memory_space<vmem>>) attributes {dimension_semantics = [#tpu.dimension_semantics<parallel>], iteration_bounds = array<i64: 2>, scalar_prefetch = 0 : i64, scratch_operands = 0 : i64, tpu.core_type = #tpu.core_type<tc>, window_params = [{pipeline_mode = #tpu.pipeline_mode<synchronous>, transform_indices = @transform_0, window_bounds = array<i64: 161, 161>}, {pipeline_mode = #tpu.pipeline_mode<synchronous>, transform_indices = @transform_1, window_bounds = array<i64: 161, 161>}, {pipeline_mode = #tpu.pipeline_mode<synchronous>, transform_indices = @transform_2, window_bounds = array<i64: 161, 161>}, {transform_indices = @transform_3, window_bounds = array<i64: 161, 128>}, {transform_indices = @transform_4, window_bounds = array<i64: 161, 128>}]} {
    %c0 = arith.constant 0 : index
    %c0_0 = arith.constant 0 : index
    %0 = vector.load %arg4[%c0, %c0_0] : memref<161x128xf32, #tpu.memory_space<vmem>>, vector<161x128xf32>
    %c0_1 = arith.constant 0 : index
    %c0_2 = arith.constant 0 : index
    %1 = vector.load %arg3[%c0_1, %c0_2] : memref<161x161xbf16, #tpu.memory_space<vmem>>, vector<161x161xbf16>
    %2 = arith.truncf %0 : vector<161x128xf32> to vector<161x128xbf16>
    %cst = arith.constant dense<0.000000e+00> : vector<161x128xf32>
    %3 = tpu.matmul %1, %2, %cst {dimension_numbers = #tpu.dot_dimension_numbers<[1], [0], [0], [1], [0, 0, 1, 1], [], []>} : vector<161x161xbf16>, vector<161x128xbf16>, vector<161x128xf32> -> vector<161x128xf32>
    %c0_3 = arith.constant 0 : index
    %c0_4 = arith.constant 0 : index
    %4 = vector.load %arg1[%c0_3, %c0_4] : memref<161x161xf32, #tpu.memory_space<vmem>>, vector<161x161xf32>
    %cst_5 = arith.constant 5.000000e-01 : f32
    %5 = vector.broadcast %cst_5 : f32 to vector<161x161xf32>
    %6 = arith.cmpf ogt, %4, %5 : vector<161x161xf32>
    %c0_6 = arith.constant 0 : index
    %c0_7 = arith.constant 0 : index
    %7 = vector.load %arg2[%c0_6, %c0_7] : memref<161x161xf32, #tpu.memory_space<vmem>>, vector<161x161xf32>
    %cst_8 = arith.constant 5.000000e-01 : f32
    %8 = vector.broadcast %cst_8 : f32 to vector<161x161xf32>
    %9 = arith.cmpf ogt, %7, %8 : vector<161x161xf32>
    %10 = arith.andi %6, %9 : vector<161x161xi1>
    %c0_9 = arith.constant 0 : index
    %c0_10 = arith.constant 0 : index
    %11 = vector.load %arg2[%c0_9, %c0_10] : memref<161x161xf32, #tpu.memory_space<vmem>>, vector<161x161xf32>
    %cst_11 = arith.constant 5.000000e-01 : f32
    %12 = vector.broadcast %cst_11 : f32 to vector<161x161xf32>
    %13 = arith.mulf %12, %11 : vector<161x161xf32>
    %14 = arith.truncf %13 : vector<161x161xf32> to vector<161x161xbf16>
    %cst_12 = arith.constant 0.000000e+00 : bf16
    %15 = vector.broadcast %cst_12 : bf16 to vector<161x161xbf16>
    %16 = arith.select %10, %14, %15 : vector<161x161xi1>, vector<161x161xbf16>
    %17 = arith.truncf %3 : vector<161x128xf32> to vector<161x128xbf16>
    %cst_13 = arith.constant dense<0.000000e+00> : vector<161x128xf32>
    %18 = tpu.matmul %16, %17, %cst_13 {dimension_numbers = #tpu.dot_dimension_numbers<[1], [0], [0], [1], [0, 0, 1, 1], [], []>} : vector<161x161xbf16>, vector<161x128xbf16>, vector<161x128xf32> -> vector<161x128xf32>
    %19 = arith.addf %0, %18 : vector<161x128xf32>
    %c0_14 = arith.constant 0 : index
    %c0_15 = arith.constant 0 : index
    %20 = vector.load %arg5[%c0_14, %c0_15] : memref<161x128xf32, #tpu.memory_space<vmem>>, vector<161x128xf32>
    tpu.vector_store %arg5[%c0_14, %c0_15], %19 {strides = array<i32>} : memref<161x128xf32, #tpu.memory_space<vmem>>, vector<161x128xf32>,
    return
  }
  func.func @transform_0(%arg0: i32) -> (i32, i32) {
    %c0_i32 = arith.constant 0 : i32
    %c0_i32_0 = arith.constant 0 : i32
    %c0_i32_1 = arith.constant 0 : i32
    return %c0_i32, %c0_i32_0 : i32, i32
  }
  func.func @transform_1(%arg0: i32) -> (i32, i32) {
    %c0_i32 = arith.constant 0 : i32
    %c0_i32_0 = arith.constant 0 : i32
    %c0_i32_1 = arith.constant 0 : i32
    return %c0_i32, %c0_i32_0 : i32, i32
  }
  func.func @transform_2(%arg0: i32) -> (i32, i32) {
    %c0_i32 = arith.constant 0 : i32
    %c0_i32_0 = arith.constant 0 : i32
    %c0_i32_1 = arith.constant 0 : i32
    return %c0_i32, %c0_i32_0 : i32, i32
  }
  func.func @transform_3(%arg0: i32) -> (i32, i32) {
    %c0_i32 = arith.constant 0 : i32
    %c0_i32_0 = arith.constant 0 : i32
    return %c0_i32, %arg0 : i32, i32
  }
  func.func @transform_4(%arg0: i32) -> (i32, i32) {
    %c0_i32 = arith.constant 0 : i32
    %c0_i32_0 = arith.constant 0 : i32
    return %c0_i32, %arg0 : i32, i32
  }
}

</mosaic_0001>

<bundles_post_ra>
// kernel: tpu_custom_call.1
= control target key start
LH: loop header
LB: loop body
LE: loop exit
PB: predicated region body
PF: predicated region fallthrough
CT: control target
= control target key end

     0   :  { %s2234_s0 = inlined_call_operand.hbm [shape: f32[161,161], index: 0, kind: input, shape index: {}]   ;;  %s2235_s1 = inlined_call_operand.hbm [shape: f32[161,161], index: 1, kind: input, shape index: {}]   ;;  %s2236_s2 = inlined_call_operand.hbm [shape: bf16[161,161], index: 2, kind: input, shape index: {}]   ;;  %s2237_s3 = inlined_call_operand.hbm [shape: f32[161,256], index: 3, kind: input, shape index: {}]   ;;  %s2238_s4 = inlined_call_operand.hbm [shape: f32[161,256], index: 4, kind: output, shape index: {}]  }
   0x1   :  { %2244 = sst [smem:[#allocation16_spill]] %s2235_s1 }
   0x2   :  { %9 = vsyncpa [#allocation3], 0 }
   0x3   :  { %10 = vsyncpa [#allocation6], 0 }
   0x4   :  { %11 = vsyncpa [#allocation9], 0 }
   0x5   :  { %13 = vsyncpa [#allocation9 + $0x1], 0 }
   0x6   :  { %14 = vsyncpa [#allocation4], 0 }
   0x7   :  { %16 = vsyncpa [#allocation4 + $0x1], 0  ;;  %s1639_s15 = smov 0   ;;  %s1641_s16 = smov 0  }
   0x8   :  { %s1643_s17 = smov 0   ;;  %s1645_s18 = smov 0  }
   0x9 LB: > { %s1660_s19 = sadd.s32 4294967295, %s1599_s18   ;;  %s1213_s20 = sadd.s32 4294967294, %s1599_s18   ;;  %s1599_s18 = sphi %s1645_s18, %s2343_s18   ;;  %s1595_s17 = sphi %s1643_s17, %s2342_s17   ;;  %s1591_s16 = sphi %s1641_s16, %s2341_s16   ;;  %s1587_s15 = sphi %s1639_s15, %s2340_s15  }
   0xa   : > { %s1664_s21 = sadd.s32 1, %s1599_s18   ;;  %s92_s22 = sadd.s32 1, %s1595_s17 }
   0xb   : > { %s89_s23 = ssub.s32 %s1599_s18, %s1664_s21  ;;  %p99_p0 = scmp.ne.s32.totalorder %s1595_s17, %s1591_s16 }
   0xc   : > { %p90_p1 = scmp.eq.s32.totalorder %s89_s23, 0  ;;  %p100_p2 = scmp.eq.s32.totalorder %s1599_s18, 0 }
   0xd   : > { %p105_p3 = scmp.ne.s32.totalorder %s1591_s16, %s1587_s15  ;;  %p2240_p4 = scmp.eq.s32.totalorder %s1660_s19, 0 }
   0xe   : > { %s1676_s24 = scalar_select %p90_p1, %s1595_s17, %s92_s22  }
   0xf   : > { %p1678_p5 = por %p100_p2, %p99_p0  ;;  %p1684_p6 = por %p2240_p4, %p105_p3 }
  0x10   : > { %2245 = sst [smem:[#allocation15_spill]] %s1676_s24  ;;  %p129_p7 = scmp.eq.s32.totalorder %s1660_s19, 1 }
  0x11   : > { %s2246_s25 = scalar_select %p1678_p5, 1, 0 }
  0x12   : > { %s2247_s26 = scalar_select %p1684_p6, 1, 0 }
  0x13   : > { %p135_p8 = scmp.eq.s32.totalorder %s1213_s20, 1  ;;  %p1214_p9 = scmp.ge.s32.totalorder %s1599_s18, 1 }
  0x14   : > { %p142_p10 = scmp.lt.s32.totalorder %s1599_s18, 3  ;;  %p1691_p11 = por %p129_p7, %p99_p0 }
  0x15   : > { %p1695_p12 = por %p135_p8, %p105_p3  ;;  %s1601_s30 = smov [#allocation5]  }
  0x16   : > { %s2248_s27 = scalar_select %p1691_p11, 1, 0 }
  0x17   : > { %s2249_s28 = scalar_select %p1695_p12, 1, 0 }
  0x18   : > { %p1699_p13 = pnand %p1214_p9, %p142_p10  ;;  %s167_s5 = sshll.u32 %s1601_s30, 4  ;;  %s168_s5 = int_to_ptr.vmem [resolvable:$true] %s167_s5 }
  0x19   : > { %s1602_s7 = smov [#allocation2]   ;;  %s2252_s1 = sld [smem:[#allocation16_spill]] }
  0x1a   : > { %s2250_s29 = scalar_select %p1699_p13, 1, 0 }
  0x1b   : > { %p1289_p1 = pneg %p1699_p13  ;;  %s154_s8 = sshll.u32 %s1602_s7, 4  ;;  %s155_s8 = int_to_ptr.vmem [resolvable:$true] %s154_s8 }
  0x1d   : > { %p1708_p6 = pnand %p1289_p1, %p2240_p4 }
  0x1f   : > { %s1411_s11 = scalar_lea.hbm %s2252_s1, 5376  ;;  %p1721_p7 = pneg %p1708_p6 }
  0x20   : > { %p1412_p3 = scmp.ne.s32.totalorder %s2252_s1, %s1411_s11  ;;  %p1418_p10 = scmp.lt.u32.totalorder %s1411_s11, %s2252_s1 }
  0x22   : > { %p1414_p8 = pnand %p1721_p7, %p1412_p3 }
  0x24   : > { %p1415_p9 = pneg %p1414_p8 }
  0x26   : > { %p1420_p1 = pnand %p1418_p10, %p1415_p9 }
  0x28   : > { %1423 = shalt.err (!%p1420_p1)
}
  0x29   : > { %s1424_s23 = scalar_lea.vmem %s168_s5, 5376  ;;  %p1432_p12 = scmp.lt.s32.totalorder %s168_s5, %s168_s5 }
  0x2a   : > { %p1425_p2 = scmp.ne.s32.totalorder %s168_s5, %s1424_s23  ;;  %p1433_p11 = scmp.lt.s32.totalorder %s1424_s23, %s1424_s23 }
  0x2c   : > { %p1427_p4 = pnand %p1425_p2, %p1721_p7  ;;  %p1434_p13 = por %p1433_p11, %p1432_p12 }
  0x2e   : > { %p1428_p0 = pneg %p1427_p4 }
  0x30   : > { %p1435_p5 = pnand %p1434_p13, %p1428_p0 }
  0x32   : > { %1438 = shalt.err (!%p1435_p5)
}
  0x33   : > { %s1603_s30 = smov 256   ;;  %s1604_s7 = smov 16  }
  0x34   : > { %1295 = dma.hbm_to_vmem [thread:$0]  (!%p1708_p6), %s2252_s1, 5376, %s168_s5, [#allocation6], %s1603_s30, %s1603_s30, %s1604_s7  }
  0x35   : > { %p2254_p2 = scmp.ne.s32.totalorder %s2246_s25, 0  ;;  %p2255_p4 = scmp.lt.s32.totalorder %s1599_s18, 2 }
  0x36   : > { %s1439_s20 = scalar_lea.hbm %s2234_s0, 5376 }
  0x37   : > { %p1743_p3 = pnand %p2255_p4, %p2254_p2  ;;  %p1440_p5 = scmp.ne.s32.totalorder %s2234_s0, %s1439_s20 }
  0x38   : > { %p1446_p13 = scmp.lt.u32.totalorder %s1439_s20, %s2234_s0 }
  0x39   : > { %s2256_s11 = scalar_select %p1743_p3, 1, 0 }
  0x3a   : > { %p1442_p11 = pnand %p1440_p5, %p1721_p7 }
  0x3c   : > { %p1443_p12 = pneg %p1442_p11 }
  0x3e   : > { %p1448_p0 = pnand %p1446_p13, %p1443_p12 }
  0x40   : > { %1451 = shalt.err (!%p1448_p0)
}
  0x41   : > { %s1452_s25 = scalar_lea.vmem %s155_s8, 5376  ;;  %p1460_p1 = scmp.lt.s32.totalorder %s155_s8, %s155_s8 }
  0x42   : > { %p1453_p8 = scmp.ne.s32.totalorder %s155_s8, %s1452_s25  ;;  %p1461_p2 = scmp.lt.s32.totalorder %s1452_s25, %s1452_s25 }
  0x44   : > { %p1455_p9 = pnand %p1453_p8, %p1721_p7  ;;  %p1462_p4 = por %p1461_p2, %p1460_p1 }
  0x46   : > { %p1456_p10 = pneg %p1455_p9 }
  0x48   : > { %p1463_p3 = pnand %p1462_p4, %p1456_p10 }
  0x4a   : > { %1466 = shalt.err (!%p1463_p3)
}
  0x4b   : > { %1292 = dma.hbm_to_vmem [thread:$0]  (!%p1708_p6), %s2234_s0, 5376, %s155_s8, [#allocation3], %s1603_s30, %s1603_s30, %s1604_s7  }
  0x4c   : > { %s1605_s13 = smov [#allocation7]   ;;  %s1467_s9 = scalar_lea.hbm %s2236_s2, 2688 }
  0x4d   : > { %s180_s20 = sshll.u32 %s1605_s13, 4  ;;  %p1468_p3 = scmp.ne.s32.totalorder %s2236_s2, %s1467_s9  ;;  %s181_s20 = int_to_ptr.vmem [resolvable:$true] %s180_s20 }
  0x4e   : > { %p1474_p12 = scmp.lt.u32.totalorder %s1467_s9, %s2236_s2 }
  0x4f   : > { %p1470_p5 = pnand %p1468_p3, %p1721_p7 }
  0x51   : > { %p1471_p11 = pneg %p1470_p5 }
  0x53   : > { %p1476_p13 = pnand %p1474_p12, %p1471_p11 }
  0x55   : > { %1479 = shalt.err (!%p1476_p13)
}
  0x56   : > { %s1480_s8 = scalar_lea.vmem %s181_s20, 2688  ;;  %p1488_p10 = scmp.lt.s32.totalorder %s181_s20, %s181_s20 }
  0x57   : > { %p1481_p0 = scmp.ne.s32.totalorder %s181_s20, %s1480_s8  ;;  %p1489_p1 = scmp.lt.s32.totalorder %s1480_s8, %s1480_s8 }
  0x59   : > { %p1483_p8 = pnand %p1481_p0, %p1721_p7  ;;  %p1490_p2 = por %p1489_p1, %p1488_p10 }
  0x5b   : > { %p1484_p9 = pneg %p1483_p8 }
  0x5d   : > { %p1491_p4 = pnand %p1490_p2, %p1484_p9 }
  0x5f   : > { %1494 = shalt.err (!%p1491_p4)
}
  0x60   : > { %s1606_s7 = smov 128   ;;  %s1607_s1 = smov 8  }
  0x61   : > { %1298 = dma.hbm_to_vmem [thread:$0]  (!%p1708_p6), %s2236_s2, 2688, %s181_s20, [#allocation6], %s1606_s7, %s1606_s7, %s1607_s1  }
  0x62   : > { %s194_s10 = sand.u32 1, %s1595_s17   ;;  %s1219_s12 = sshll.u32 %s1599_s18, 7 }
  0x63   : > { %s1271_s13 = smul.u32 168, %s194_s10  ;;  %s1793_s9 = scalar_lea.hbm %s2237_s3, %s1219_s12 }
  0x64   : > { %s1797_s25 = scalar_lea.sflag [#allocation9], %s194_s10  ;;  %s1495_s8 = scalar_lea.hbm %s1793_s9, 2688 }
  0x65   : > { %s198_s6 = scalar_lea.vmem [#allocation8], %s1271_s13  ;;  %p1496_p6 = scmp.ne.s32.totalorder %s1793_s9, %s1495_s8 }
  0x66   : > { %s204_s5 = sshll.u32 %s198_s6, 4  ;;  %p2257_p7 = scmp.ne.s32.totalorder %s2256_s11, 0  ;;  %s1795_s5 = int_to_ptr.vmem [resolvable:$true] %s204_s5 }
  0x67   : > { %s1500_s14 = scalar_lea.hbm %s2237_s3, 5376  ;;  %p1501_p12 = scmp.lt.u32.totalorder %s1793_s9, %s2237_s3 }
  0x68   : > { %p1497_p3 = pneg %p2257_p7  ;;  %p1502_p13 = scmp.lt.u32.totalorder %s1500_s14, %s1495_s8 }
  0x69   : > { %p1504_p8 = scmp.lt.u32.totalorder %s1495_s8, %s1793_s9 }
  0x6a   : > { %p1498_p5 = pnand %p1497_p3, %p1496_p6  ;;  %p1503_p0 = por %p1502_p13, %p1501_p12 }
  0x6c   : > { %p1499_p11 = pneg %p1498_p5  ;;  %p1505_p9 = por %p1504_p8, %p1503_p0 }
  0x6e   : > { %p1506_p10 = pnand %p1505_p9, %p1499_p11 }
  0x70   : > { %1509 = shalt.err (!%p1506_p10)
}
  0x71   : > { %s1510_s10 = scalar_lea.vmem %s1795_s5, 2688  ;;  %s1608_s13 = smov [#allocation8]  }
  0x72   : > { %p1511_p1 = scmp.ne.s32.totalorder %s1795_s5, %s1510_s10  ;;  %s1515_s23 = sshll.u32 %s1608_s13, 4  ;;  %s1516_s23 = int_to_ptr.vmem [resolvable:$false] %s1515_s23 }
  0x73   : > { %s1517_s6 = scalar_lea.vmem %s1516_s23, 5376  ;;  %p1518_p6 = scmp.lt.s32.totalorder %s1795_s5, %s1516_s23 }
  0x74   : > { %p1513_p2 = pnand %p1511_p1, %p1497_p3  ;;  %p1519_p5 = scmp.lt.s32.totalorder %s1517_s6, %s1510_s10 }
  0x76   : > { %p1514_p4 = pneg %p1513_p2  ;;  %p1520_p12 = por %p1519_p5, %p1518_p6 }
  0x78   : > { %p1521_p13 = pnand %p1520_p12, %p1514_p4 }
  0x7a   : > { %1524 = shalt.err (!%p1521_p13)
}
  0x7b   : > { %1302 = dma.hbm_to_vmem [thread:$0]  (!%p2257_p7), %s1793_s9, 2688, %s1795_s5, %s1797_s25, %s1603_s30, %s1606_s7, %s1607_s1  }
  0x7c   : > { %p2258_p3 = scmp.ne.s32.totalorder %s2250_s29, 0 }
  0x7d   : > { %p2259_p11 = scmp.eq.s32.totalorder (!%p2258_p3), %s1660_s19, 0 }
  0x7e   : > { %216 = sbr.rel (%p2258_p3) target bundleno = 798 (0x31e), region = 36 }
  0x85   : > { %1570 = dma.done.wait (%p2259_p11), [#allocation3], 5376   ;;  %p2260_p0 = pmov %p2259_p11 }
  0x87   : > { %1572 = vsyncadd (%p2260_p0), [#allocation3], 4294961920  ;;  %p2261_p8 = pmov %p2260_p0 }
  0x88   : > { %p2262_p9 = pmov %p2260_p0 }
  0x89   : > { %1574 = dma.done.wait (%p2261_p8), [#allocation6], 8064  }
  0x8a   : > { %1576 = vsyncadd (%p2262_p9), [#allocation6], 4294959232  ;;  %s1839_s11 = sand.u32 1, %s1591_s16   ;;  %p2263_p7 = scmp.ne.s32.totalorder %s2247_s26, 0 }
  0x8b   : > { %s1272_s29 = smul.u32 168, %s1839_s11  ;;  %s231_s30 = scalar_lea.sflag [#allocation9], %s1839_s11 }
  0x8d   : > { %s1845_s7 = scalar_lea.vmem [#allocation8], %s1272_s29 }
  0x8e   : > { %1578 = dma.done.wait (%p2263_p7), %s231_s30, 2688  }
  0x8f   : > { %1580 = vsyncadd (%p2263_p7), %s231_s30, 4294964608  ;;  %v1609_v0 = vmov 0   ;;  %v260_v1 = vld [vmem:[%s1845_s7] sm:$0xff]  ;;  %v261_v2 = vld [vmem:[%s1845_s7 + $0x8] sm:$0xff]  ;;  %vm409_vm0 = vcmask 269312   ;;  %vm443_vm1 = vcmask 1040384  }
  0x90   : > { %449 = vmatprep.subr.bf16.mxu0 %v1609_v0  ;;  %934 = vmatprep.subr.bf16.mxu1 %v1609_v0  ;;  %v262_v3 = vld [vmem:[%s1845_s7 + $0x10] sm:$0xff]  ;;  %v302_v4 = vpack.c.bf16 %v261_v2, %v260_v1  ;;  %v263_v5 = vld [vmem:[%s1845_s7 + $0x18] sm:$0xff]  ;;  %v264_v7 = vld [vmem:[%s1845_s7 + $0x20] sm:$0xff]  ;;  %v1885_v34 = vsel %vm443_vm1, 65535, %v1609_v0  ;;  %s2140_s26 = scalar_lea.vmem [#allocation10], %s1272_s29  ;;  %s1268_s1 = sshll.u32 %s1660_s19, 7 }
  0x91   : > { %v303_v6 = vpack.c.bf16 %v263_v5, %v262_v3  ;;  %v265_v8 = vld [vmem:[%s1845_s7 + $0x28] sm:$0xff]  ;;  %v266_v9 = vld [vmem:[%s1845_s7 + $0x30] sm:$0xff]  ;;  %v267_v11 = vld [vmem:[%s1845_s7 + $0x38] sm:$0xff]  ;;  %s1109_s9 = sshll.u32 %s2140_s26, 4  ;;  %s2186_s8 = scalar_lea.hbm %s2238_s4, %s1268_s1  ;;  %s2188_s9 = int_to_ptr.vmem [resolvable:$true] %s1109_s9 }
  0x92   : > { %450 = vmatpush1.bf16.msra.mxu0 %v302_v4  ;;  %v304_v10 = vpack.c.bf16 %v265_v8, %v264_v7  ;;  %v1360_v12 = vld [vmem:[#allocation7 + $0x4] ss:$8 sps:$4 sm:$0xff]   ;;  %v305_v13 = vpack.c.bf16 %v267_v11, %v266_v9  ;;  %v269_v15 = vld [vmem:[%s1845_s7 + $0x48] sm:$0xff]  ;;  %v280_v31 = vld [vmem:[%s1845_s7 + $0xa0] sm:$0x1]  ;;  %s1097_s19 = scalar_lea.sflag [#allocation4], %s1839_s11 }
  0x93   : > { %451 = vmatprep.subr.bf16.mxu0 %v1609_v0  ;;  %1246 = vmatprep.mubr.msk.bf16.mxu0 %vm409_vm0, %v1360_v12  ;;  %v268_v14 = vld [vmem:[%s1845_s7 + $0x40] sm:$0xff]  ;;  %v270_v17 = vld [vmem:[%s1845_s7 + $0x50] sm:$0xff]  ;;  %v271_v18 = vld [vmem:[%s1845_s7 + $0x58] sm:$0xff]  ;;  %v312_v33 = vpack.c.bf16 %v280_v31, %v280_v31  ;;  %s1525_s20 = scalar_lea.vmem %s2188_s9, 2688  ;;  %p2336_p1 = scmp.ne.s32.totalorder %s2248_s27, 0 }
  0x94   : > { %v306_v16 = vpack.c.bf16 %v269_v15, %v268_v14  ;;  %v307_v19 = vpack.c.bf16 %v271_v18, %v270_v17  ;;  %v272_v20 = vld [vmem:[%s1845_s7 + $0x60] sm:$0xff]  ;;  %v273_v21 = vld [vmem:[%s1845_s7 + $0x68] sm:$0xff]  ;;  %v274_v23 = vld [vmem:[%s1845_s7 + $0x70] sm:$0xff]  ;;  %p1526_p10 = scmp.ne.s32.totalorder %s2188_s9, %s1525_s20  ;;  %s1610_s24 = smov [#allocation10]  }
  0x95   : > { %v308_v22 = vpack.c.bf16 %v273_v21, %v272_v20  ;;  %v275_v24 = vld [vmem:[%s1845_s7 + $0x78] sm:$0xff]  ;;  %v276_v26 = vld [vmem:[%s1845_s7 + $0x80] sm:$0xff]  ;;  %v277_v27 = vld [vmem:[%s1845_s7 + $0x88] sm:$0xff]  ;;  %v447_v35 = vand.u32 %v1885_v34, %v312_v33  ;;  %s1529_s14 = sshll.u32 %s1610_s24, 4  ;;  %s1530_s14 = int_to_ptr.vmem [resolvable:$false] %s1529_s14 }
  0x96   : > { %452 = vmatpush1.bf16.msra.mxu0 %v303_v6  ;;  %v309_v25 = vpack.c.bf16 %v275_v24, %v274_v23  ;;  %v310_v28 = vpack.c.bf16 %v277_v27, %v276_v26  ;;  %v278_v29 = vld [vmem:[%s1845_s7 + $0x90] sm:$0xff]  ;;  %v279_v30 = vld [vmem:[%s1845_s7 + $0x98] sm:$0xff]  ;;  %p1527_p2 = pnand %p1526_p10, %p2336_p1  ;;  %s1531_s12 = scalar_lea.vmem %s1530_s14, 5376 }
  0x97   : > { %453 = vmatprep.subr.bf16.mxu0 %v1609_v0  ;;  %v311_v32 = vpack.c.bf16 %v279_v30, %v278_v29  ;;  %v1358_v36 = vld [vmem:[#allocation7] ss:$8 sps:$4 sm:$0xff]   ;;  %v1361_v37 = vld [vmem:[#allocation7 + $0x14] ss:$8 sps:$4 sm:$0xff]   ;;  %v1363_v38 = vld [vmem:[#allocation7 + $0x10] ss:$8 sps:$4 sm:$0xff]   ;;  %p1532_p6 = scmp.lt.s32.totalorder %s2188_s9, %s1530_s14  ;;  %p1533_p5 = scmp.lt.s32.totalorder %s1531_s12, %s1525_s20 }
  0x98   : > { %v1364_v39 = vld [vmem:[#allocation7 + $0x24] ss:$8 sps:$4 sm:$0xff]   ;;  %v1366_v40 = vld [vmem:[#allocation7 + $0x20] ss:$8 sps:$4 sm:$0xff]   ;;  %v1367_v41 = vld [vmem:[#allocation7 + $0x34] ss:$8 sps:$4 sm:$0xff]   ;;  %p1528_p4 = pneg %p1527_p2 }
  0x99   : > { %v1369_v42 = vld [vmem:[#allocation7 + $0x30] ss:$8 sps:$4 sm:$0xff]   ;;  %v1370_v43 = vld [vmem:[#allocation7 + $0x44] ss:$8 sps:$4 sm:$0xff]   ;;  %v1372_v44 = vld [vmem:[#allocation7 + $0x40] ss:$8 sps:$4 sm:$0xff]   ;;  %p1534_p12 = por %p1533_p5, %p1532_p6 }
  0x9a   : > { %454 = vmatpush1.bf16.msra.mxu0 %v304_v10  ;;  %v1373_v45 = vld [vmem:[#allocation7 + $0x54] ss:$8 sps:$4 sm:$0xff]   ;;  %v1375_v46 = vld [vmem:[#allocation7 + $0x50] ss:$8 sps:$4 sm:$0xff]   ;;  %v1376_v47 = vld [vmem:[#allocation7 + $0x64] ss:$8 sps:$4 sm:$0xff]  }
  0x9b   : > { %455 = vmatprep.subr.bf16.mxu0 %v1609_v0  ;;  %v1378_v48 = vld [vmem:[#allocation7 + $0x60] ss:$8 sps:$4 sm:$0xff]   ;;  %v1379_v49 = vld [vmem:[#allocation7 + $0x74] ss:$8 sps:$4 sm:$0xff]   ;;  %v1381_v50 = vld [vmem:[#allocation7 + $0x70] ss:$8 sps:$4 sm:$0xff]   ;;  %p1535_p13 = pnand %p1534_p12, %p1528_p4 }
  0x9c   : > { %v1382_v51 = vld [vmem:[#allocation7 + $0x84] ss:$8 sps:$4 sm:$0xff]   ;;  %v1384_v52 = vld [vmem:[#allocation7 + $0x80] ss:$8 sps:$4 sm:$0xff]   ;;  %v1385_v53 = vld [vmem:[#allocation7 + $0x94] ss:$8 sps:$4 sm:$0xff]  }
  0x9d   : > { %v301_v54 = vld [vmem:[#allocation7 + $0xa0] sm:$0x11]  ;;  %v1387_v55 = vld [vmem:[#allocation7 + $0x90] ss:$8 sps:$4 sm:$0xff]   ;;  %v656_v59 = vld [vmem:[#allocation5 + $0x18] sm:$0xff] }
  0x9e   : > { %456 = vmatpush1.bf16.msra.mxu0 %v305_v13  ;;  %v1245_v56 = vcombine.high %v301_v54, %v301_v54  ;;  %v1244_v57 = vcombine.low %v301_v54, %v301_v54  ;;  %v654_v58 = vld [vmem:[#allocation5 + $0x8] sm:$0xff]  ;;  %v570_v60 = vld [vmem:[#allocation2 + $0x8] sm:$0xff]  ;;  %v782_v63 = vmul.f32 0.5, %v656_v59  ;;  %vm698_vm5 = vcmp.gt.f32.partialorder %v656_v59, 0.5 }
  0x9f   : > { %457 = vmatprep.subr.bf16.mxu0 %v1609_v0  ;;  %v572_v61 = vld [vmem:[#allocation2 + $0x18] sm:$0xff]  ;;  %v780_v62 = vmul.f32 0.5, %v654_v58  ;;  %vm612_vm2 = vcmp.gt.f32.partialorder %v570_v60, 0.5  ;;  %vm696_vm4 = vcmp.gt.f32.partialorder %v654_v58, 0.5  ;;  %v660_v59 = vld [vmem:[#allocation5 + $0x38] sm:$0xff] }
  0xa0   : > { %vm614_vm3 = vcmp.gt.f32.partialorder %v572_v61, 0.5  ;;  %vm738_vm6 = vmand %vm612_vm2, %vm696_vm4  ;;  %v576_v58 = vld [vmem:[#allocation2 + $0x38] sm:$0xff]  ;;  %vm702_vm2 = vcmp.gt.f32.partialorder %v660_v59, 0.5 }
  0xa1   : > { %v822_v1 = vpack.c.bf16 %v782_v63, %v780_v62  ;;  %vm740_vm7 = vmand %vm614_vm3, %vm698_vm5  ;;  %vm618_vm1 = vcmp.gt.f32.partialorder %v576_v58, 0.5  ;;  %v670_v58 = vld [vmem:[#allocation5 + $0x88] sm:$0xff] }
  0xa2   : > { %458 = vmatpush1.bf16.msra.mxu0 %v306_v16  ;;  %vm844_vm8 = vmpackc.low %vm740_vm7, %vm738_vm6 }
  0xa3   : > { %459 = vmatprep.subr.bf16.mxu0 %v1609_v0  ;;  %v866_v2 = vsel %vm844_vm8, %v822_v1, 0  ;;  %vm1922_vm5 = vmand %vm618_vm1, %vm702_vm2 }
  0xa4   : > { %1257 = vmatprep.mubr.msk.bf16.mxu1 %vm409_vm0, %v866_v2 }
  0xa6   : > { %460 = vmatpush1.bf16.msra.mxu0 %v307_v19 }
  0xa7   : > { %461 = vmatprep.subr.bf16.mxu0 %v1609_v0 }
  0xaa   : > { %462 = vmatpush1.bf16.msra.mxu0 %v308_v22 }
  0xab   : > { %463 = vmatprep.subr.bf16.mxu0 %v1609_v0 }
  0xae   : > { %464 = vmatpush1.bf16.msra.mxu0 %v309_v25 }
  0xaf   : > { %465 = vmatprep.subr.bf16.mxu0 %v1609_v0 }
  0xb2   : > { %466 = vmatpush1.bf16.msra.mxu0 %v310_v28 }
  0xb3   : > { %467 = vmatprep.subr.bf16.mxu0 %v1609_v0 }
  0xb6   : > { %468 = vmatpush1.bf16.msra.mxu0 %v311_v32 }
  0xb7   : > { %469 = vmatprep.subr.bf16.mxu0 %v1609_v0 }
  0xba   : > { %470 = vmatpush1.bf16.msra.mxu0 %v447_v35 }
  0xbd   : > { %482 = vmatmul.mubr.bf16.vlgmr.msra.gmra.mrb[0].mxu0 %v1358_v36 }
  0xbe   : > { %1247 = vmatprep.mubr.msk.bf16.mxu0 %vm409_vm0, %v1361_v37 }
  0xc5   : > { %490 = vmatmul.mubr.bf16.gmra.mrb[4].mxu0 %v1363_v38 }
  0xc6   : > { %1248 = vmatprep.mubr.msk.bf16.mxu0 %vm409_vm0, %v1364_v39 }
  0xcd   : > { %498 = vmatmul.mubr.bf16.gmra.mrb[8].mxu0 %v1366_v40 }
  0xce   : > { %1249 = vmatprep.mubr.msk.bf16.mxu0 %vm409_vm0, %v1367_v41 }
  0xd5   : > { %506 = vmatmul.mubr.bf16.gmra.mrb[12].mxu0 %v1369_v42 }
  0xd6   : > { %1250 = vmatprep.mubr.msk.bf16.mxu0 %vm409_vm0, %v1370_v43 }
  0xdd   : > { %514 = vmatmul.mubr.bf16.gmra.mrb[16].mxu0 %v1372_v44 }
  0xde   : > { %1251 = vmatprep.mubr.msk.bf16.mxu0 %vm409_vm0, %v1373_v45 }
  0xe5   : > { %522 = vmatmul.mubr.bf16.gmra.mrb[20].mxu0 %v1375_v46 }
  0xe6   : > { %1252 = vmatprep.mubr.msk.bf16.mxu0 %vm409_vm0, %v1376_v47 }
  0xed   : > { %530 = vmatmul.mubr.bf16.gmra.mrb[24].mxu0 %v1378_v48 }
  0xee   : > { %1253 = vmatprep.mubr.msk.bf16.mxu0 %vm409_vm0, %v1379_v49  ;;  %v569_v49 = vld [vmem:[#allocation2] sm:$0xff] }
  0xef   : > { %vm611_vm9 = vcmp.gt.f32.partialorder %v569_v49, 0.5 }
  0xf5   : > { %538 = vmatmul.mubr.bf16.gmra.mrb[28].mxu0 %v1381_v50  ;;  %v653_v50 = vld [vmem:[#allocation5] sm:$0xff] }
  0xf6   : > { %1254 = vmatprep.mubr.msk.bf16.mxu0 %vm409_vm0, %v1382_v51  ;;  %vm695_vm10 = vcmp.gt.f32.partialorder %v653_v50, 0.5  ;;  %v779_v62 = vmul.f32 0.5, %v653_v50  ;;  %v595_v50 = vld [vmem:[#allocation2 + $0xd0] sm:$0xff] }
  0xf7   : > { %vm1909_vm15 = vmand %vm611_vm9, %vm695_vm10 }
  0xfd   : > { %546 = vmatmul.mubr.bf16.gmra.mrb[32].mxu0 %v1384_v52  ;;  %v571_v52 = vld [vmem:[#allocation2 + $0x10] sm:$0xff] }
  0xfe   : > { %1255 = vmatprep.mubr.msk.bf16.mxu0 %vm409_vm0, %v1385_v53  ;;  %v655_v53 = vld [vmem:[#allocation5 + $0x10] sm:$0xff]  ;;  %vm613_vm11 = vcmp.gt.f32.partialorder %v571_v52, 0.5  ;;  %v665_v52 = vld [vmem:[#allocation5 + $0x60] sm:$0xff] }
  0xff   : > { %vm697_vm12 = vcmp.gt.f32.partialorder %v655_v53, 0.5  ;;  %v781_v63 = vmul.f32 0.5, %v655_v53  ;;  %v791_v1 = vmul.f32 0.5, %v665_v52 }
 0x100   : > { %vm1914_vm3 = vmand %vm613_vm11, %vm697_vm12 }
 0x101   : > { %vm843_vm6 = vmpackc.low %vm1914_vm3, %vm1909_vm15 }
 0x105   : > { %554 = vmatmul.mubr.bf16.gmra.mrb[36].mxu0 %v1387_v55  ;;  %v574_v55 = vld [vmem:[#allocation2 + $0x28] sm:$0xff] }
 0x106   : > { %1256 = vmatprep.mubr.msk.bf16.mxu0 %vm409_vm0, %v1245_v56  ;;  %v658_v56 = vld [vmem:[#allocation5 + $0x28] sm:$0xff]  ;;  %vm616_vm13 = vcmp.gt.f32.partialorder %v574_v55, 0.5  ;;  %v583_v55 = vld [vmem:[#allocation2 + $0x70] sm:$0xff] }
 0x107   : > { %vm700_vm14 = vcmp.gt.f32.partialorder %v658_v56, 0.5 }
 0x108   : > { %vm1918_vm4 = vmand %vm616_vm13, %vm700_vm14 }
 0x109   : > { %vm846_vm9 = vmpackc.low %vm1922_vm5, %vm1918_vm4 }
 0x10d   : > { %562 = vmatmul.mubr.bf16.gmra.mrb[40].mxu0 %v1244_v57 }
 0x190   : > { %v483_v3 = vpop.f32.mrb[0].mxu0 }
 0x191   : > { %v485_v4 = vpop.f32.mrb[1].mxu0 }
 0x192   : > { %v486_v5 = vpop.f32.mrb[2].mxu0  ;;  %v786_v4 = vmul.f32 0.5, %v660_v59 }
 0x193   : > { %v887_v6 = vpack.c.bf16 %v486_v5, %v483_v3  ;;  %v488_v7 = vpop.f32.mrb[3].mxu0  ;;  %v784_v3 = vmul.f32 0.5, %v658_v56  ;;  %v667_v56 = vld [vmem:[#allocation5 + $0x70] sm:$0xff]  ;;  %v796_v5 = vmul.f32 0.5, %v670_v58 }
 0x194   : > { %v657_v7 = vld [vmem:[#allocation5 + $0x20] sm:$0xff]  ;;  %v793_v2 = vmul.f32 0.5, %v667_v56 }
 0x195   : > { %935 = vmatpush1.bf16.msra.mxu1 %v887_v6  ;;  %v573_v6 = vld [vmem:[#allocation2 + $0x20] sm:$0xff]  ;;  %vm699_vm8 = vcmp.gt.f32.partialorder %v657_v7, 0.5 }
 0x196   : > { %936 = vmatprep.subr.bf16.mxu1 %v1609_v0  ;;  %vm615_vm7 = vcmp.gt.f32.partialorder %v573_v6, 0.5 }
 0x197   : > { %vm1935_vm14 = vmand %vm615_vm7, %vm699_vm8 }
 0x198   : > { %v491_v8 = vpop.f32.mrb[4].mxu0 }
 0x199   : > { %v493_v9 = vpop.f32.mrb[5].mxu0 }
 0x19a   : > { %v494_v10 = vpop.f32.mrb[6].mxu0  ;;  %v821_v9 = vpack.c.bf16 %v781_v63, %v779_v62 }
 0x19b   : > { %v888_v11 = vpack.c.bf16 %v494_v10, %v491_v8  ;;  %v496_v12 = vpop.f32.mrb[7].mxu0  ;;  %v602_v10 = vld [vmem:[#allocation2 + $0x108] sm:$0xff] }
 0x19d   : > { %937 = vmatpush1.bf16.msra.mxu1 %v888_v11  ;;  %v575_v11 = vld [vmem:[#allocation2 + $0x30] sm:$0xff] }
 0x19e   : > { %938 = vmatprep.subr.bf16.mxu1 %v1609_v0  ;;  %vm617_vm10 = vcmp.gt.f32.partialorder %v575_v11, 0.5  ;;  %v587_v11 = vld [vmem:[#allocation2 + $0x90] sm:$0xff] }
 0x1a0   : > { %v499_v13 = vpop.f32.mrb[8].mxu0 }
 0x1a1   : > { %v501_v14 = vpop.f32.mrb[9].mxu0 }
 0x1a2   : > { %v502_v15 = vpop.f32.mrb[10].mxu0  ;;  %v578_v14 = vld [vmem:[#allocation2 + $0x48] sm:$0xff] }
 0x1a3   : > { %v889_v16 = vpack.c.bf16 %v502_v15, %v499_v13  ;;  %v504_v17 = vpop.f32.mrb[11].mxu0  ;;  %v662_v15 = vld [vmem:[#allocation5 + $0x48] sm:$0xff]  ;;  %vm620_vm12 = vcmp.gt.f32.partialorder %v578_v14, 0.5 }
 0x1a4   : > { %v824_v17 = vpack.c.bf16 %v786_v4, %v784_v3  ;;  %vm704_vm13 = vcmp.gt.f32.partialorder %v662_v15, 0.5  ;;  %v674_v14 = vld [vmem:[#allocation5 + $0xa8] sm:$0xff]  ;;  %v597_v4 = vld [vmem:[#allocation2 + $0xe0] sm:$0xff] }
 0x1a5   : > { %939 = vmatpush1.bf16.msra.mxu1 %v889_v16  ;;  %vm1943_vm3 = vmand %vm620_vm12, %vm704_vm13 }
 0x1a6   : > { %940 = vmatprep.subr.bf16.mxu1 %v1609_v0 }
 0x1a8   : > { %v507_v18 = vpop.f32.mrb[12].mxu0 }
 0x1a9   : > { %v509_v19 = vpop.f32.mrb[13].mxu0 }
 0x1aa   : > { %v510_v20 = vpop.f32.mrb[14].mxu0  ;;  %v664_v19 = vld [vmem:[#allocation5 + $0x58] sm:$0xff] }
 0x1ab   : > { %v890_v21 = vpack.c.bf16 %v510_v20, %v507_v18  ;;  %v512_v22 = vpop.f32.mrb[15].mxu0  ;;  %v580_v18 = vld [vmem:[#allocation2 + $0x58] sm:$0xff]  ;;  %vm706_vm1 = vcmp.gt.f32.partialorder %v664_v19, 0.5 }
 0x1ac   : > { %v865_v22 = vsel %vm843_vm6, %v821_v9, 0  ;;  %vm622_vm15 = vcmp.gt.f32.partialorder %v580_v18, 0.5  ;;  %v669_v9 = vld [vmem:[#allocation5 + $0x80] sm:$0xff] }
 0x1ad   : > { %941 = vmatpush1.bf16.msra.mxu1 %v890_v21  ;;  %vm1947_vm4 = vmand %vm622_vm15, %vm706_vm1  ;;  %v795_v18 = vmul.f32 0.5, %v669_v9 }
 0x1ae   : > { %942 = vmatprep.subr.bf16.mxu1 %v1609_v0  ;;  %vm848_vm8 = vmpackc.low %vm1947_vm4, %vm1943_vm3 }
 0x1b0   : > { %v515_v23 = vpop.f32.mrb[16].mxu0 }
 0x1b1   : > { %v517_v24 = vpop.f32.mrb[17].mxu0 }
 0x1b2   : > { %v518_v25 = vpop.f32.mrb[18].mxu0  ;;  %v783_v24 = vmul.f32 0.5, %v657_v7 }
 0x1b3   : > { %v891_v26 = vpack.c.bf16 %v518_v25, %v515_v23  ;;  %v520_v27 = vpop.f32.mrb[19].mxu0  ;;  %v601_v23 = vld [vmem:[#allocation2 + $0x100] sm:$0xff] }
 0x1b4   : > { %v788_v27 = vmul.f32 0.5, %v662_v15 }
 0x1b5   : > { %943 = vmatpush1.bf16.msra.mxu1 %v891_v26  ;;  %v589_v26 = vld [vmem:[#allocation2 + $0xa0] sm:$0xff] }
 0x1b6   : > { %944 = vmatprep.subr.bf16.mxu1 %v1609_v0 }
 0x1b8   : > { %v523_v28 = vpop.f32.mrb[20].mxu0 }
 0x1b9   : > { %v525_v29 = vpop.f32.mrb[21].mxu0 }
 0x1ba   : > { %v526_v30 = vpop.f32.mrb[22].mxu0  ;;  %v690_v29 = vld [vmem:[#allocation5 + $0x128] sm:$0xff] }
 0x1bb   : > { %v892_v31 = vpack.c.bf16 %v526_v30, %v523_v28  ;;  %v528_v32 = vpop.f32.mrb[23].mxu0  ;;  %v790_v28 = vmul.f32 0.5, %v664_v19  ;;  %v577_v30 = vld [vmem:[#allocation2 + $0x40] sm:$0xff] }
 0x1bc   : > { %vm619_vm6 = vcmp.gt.f32.partialorder %v577_v30, 0.5  ;;  %v591_v30 = vld [vmem:[#allocation2 + $0xb0] sm:$0xff]  ;;  %v594_v32 = vld [vmem:[#allocation2 + $0xc8] sm:$0xff] }
 0x1bd   : > { %945 = vmatpush1.bf16.msra.mxu1 %v892_v31  ;;  %v661_v31 = vld [vmem:[#allocation5 + $0x40] sm:$0xff] }
 0x1be   : > { %946 = vmatprep.subr.bf16.mxu1 %v1609_v0  ;;  %vm703_vm7 = vcmp.gt.f32.partialorder %v661_v31, 0.5 }
 0x1bf   : > { %vm1960_vm13 = vmand %vm619_vm6, %vm703_vm7  ;;  %vm707_vm6 = vcmp.gt.f32.partialorder %v665_v52, 0.5 }
 0x1c0   : > { %v531_v33 = vpop.f32.mrb[24].mxu0 }
 0x1c1   : > { %v533_v35 = vpop.f32.mrb[25].mxu0 }
 0x1c2   : > { %v534_v36 = vpop.f32.mrb[26].mxu0  ;;  %v663_v35 = vld [vmem:[#allocation5 + $0x50] sm:$0xff] }
 0x1c3   : > { %v893_v37 = vpack.c.bf16 %v534_v36, %v531_v33  ;;  %v536_v38 = vpop.f32.mrb[27].mxu0  ;;  %v579_v33 = vld [vmem:[#allocation2 + $0x50] sm:$0xff] }
 0x1c4   : > { %v666_v38 = vld [vmem:[#allocation5 + $0x68] sm:$0xff] }
 0x1c5   : > { %947 = vmatpush1.bf16.msra.mxu1 %v893_v37  ;;  %v582_v37 = vld [vmem:[#allocation2 + $0x68] sm:$0xff]  ;;  %vm708_vm12 = vcmp.gt.f32.partialorder %v666_v38, 0.5 }
 0x1c6   : > { %948 = vmatprep.subr.bf16.mxu1 %v1609_v0 }
 0x1c8   : > { %v539_v39 = vpop.f32.mrb[28].mxu0 }
 0x1c9   : > { %v541_v40 = vpop.f32.mrb[29].mxu0 }
 0x1ca   : > { %v542_v41 = vpop.f32.mrb[30].mxu0  ;;  %v584_v40 = vld [vmem:[#allocation2 + $0x78] sm:$0xff] }
 0x1cb   : > { %v894_v42 = vpack.c.bf16 %v542_v41, %v539_v39  ;;  %v544_v43 = vpop.f32.mrb[31].mxu0  ;;  %v826_v39 = vpack.c.bf16 %v790_v28, %v788_v27  ;;  %v668_v41 = vld [vmem:[#allocation5 + $0x78] sm:$0xff]  ;;  %v673_v27 = vld [vmem:[#allocation5 + $0xa0] sm:$0xff] }
 0x1cc   : > { %v789_v43 = vmul.f32 0.5, %v663_v35  ;;  %vm710_vm15 = vcmp.gt.f32.partialorder %v668_v41, 0.5  ;;  %v794_v49 = vmul.f32 0.5, %v668_v41 }
 0x1cd   : > { %949 = vmatpush1.bf16.msra.mxu1 %v894_v42  ;;  %v787_v42 = vmul.f32 0.5, %v661_v31  ;;  %v675_v31 = vld [vmem:[#allocation5 + $0xb0] sm:$0xff] }
 0x1ce   : > { %950 = vmatprep.subr.bf16.mxu1 %v1609_v0  ;;  %v801_v41 = vmul.f32 0.5, %v675_v31 }
 0x1cf   : > { %v825_v53 = vpack.c.bf16 %v789_v43, %v787_v42 }
 0x1d0   : > { %v547_v44 = vpop.f32.mrb[32].mxu0 }
 0x1d1   : > { %v549_v45 = vpop.f32.mrb[33].mxu0 }
 0x1d2   : > { %v550_v46 = vpop.f32.mrb[34].mxu0 }
 0x1d3   : > { %v895_v47 = vpack.c.bf16 %v550_v46, %v547_v44  ;;  %v552_v48 = vpop.f32.mrb[35].mxu0  ;;  %v870_v46 = vsel %vm848_vm8, %v826_v39, 0  ;;  %vm625_vm8 = vcmp.gt.f32.partialorder %v583_v55, 0.5  ;;  %v1399_v39 = vld [vmem:[%s1845_s7 + $0x48] sm:$0xff] }
 0x1d4   : > { %v792_v48 = vmul.f32 0.5, %v666_v38 }
 0x1d5   : > { %951 = vmatpush1.bf16.msra.mxu1 %v895_v47  ;;  %v593_v47 = vld [vmem:[#allocation2 + $0xc0] sm:$0xff] }
 0x1d6   : > { %952 = vmatprep.subr.bf16.mxu1 %v1609_v0  ;;  %v828_v59 = vpack.c.bf16 %v794_v49, %v792_v48  ;;  %v677_v48 = vld [vmem:[#allocation5 + $0xc0] sm:$0xff] }
 0x1d8   : > { %v555_v51 = vpop.f32.mrb[36].mxu0 }
 0x1d9   : > { %v557_v54 = vpop.f32.mrb[37].mxu0 }
 0x1da   : > { %v558_v57 = vpop.f32.mrb[38].mxu0  ;;  %v682_v54 = vld [vmem:[#allocation5 + $0xe8] sm:$0xff] }
 0x1db   : > { %v896_v60 = vpack.c.bf16 %v558_v57, %v555_v51  ;;  %v560_v61 = vpop.f32.mrb[39].mxu0  ;;  %v581_v51 = vld [vmem:[#allocation2 + $0x60] sm:$0xff]  ;;  %v586_v57 = vld [vmem:[#allocation2 + $0x88] sm:$0xff] }
 0x1dc   : > { %v672_v61 = vld [vmem:[#allocation5 + $0x98] sm:$0xff] }
 0x1dd   : > { %953 = vmatpush1.bf16.msra.mxu1 %v896_v60  ;;  %v588_v60 = vld [vmem:[#allocation2 + $0x98] sm:$0xff]  ;;  %v798_v6 = vmul.f32 0.5, %v672_v61 }
 0x1de   : > { %954 = vmatprep.subr.bf16.mxu1 %v1609_v0  ;;  %v659_v0 = vld [vmem:[#allocation5 + $0x30] sm:$0xff] }
 0x1df   : > { %vm701_vm11 = vcmp.gt.f32.partialorder %v659_v0, 0.5  ;;  %v785_v25 = vmul.f32 0.5, %v659_v0  ;;  %v671_v0 = vld [vmem:[#allocation5 + $0x90] sm:$0xff]  ;;  %v830_v15 = vpack.c.bf16 %v798_v6, %v796_v5  ;;  %v681_v5 = vld [vmem:[#allocation5 + $0xe0] sm:$0xff] }
 0x1e0   : > { %v563_v8 = vpop.f32.mrb[40].mxu0  ;;  %vm1939_vm2 = vmand %vm617_vm10, %vm701_vm11  ;;  %vm705_vm10 = vcmp.gt.f32.partialorder %v663_v35, 0.5  ;;  %vm624_vm11 = vcmp.gt.f32.partialorder %v582_v37, 0.5  ;;  %v797_v19 = vmul.f32 0.5, %v671_v0  ;;  %v680_v37 = vld [vmem:[#allocation5 + $0xd8] sm:$0xff] }
 0x1e1   : > { %v897_v12 = vpack.c.bf16 %v563_v8, %v563_v8  ;;  %v565_v13 = vpop.f32.mrb[41].mxu0  ;;  %v823_v36 = vpack.c.bf16 %v785_v25, %v783_v24  ;;  %vm845_vm5 = vmpackc.low %vm1939_vm2, %vm1935_vm14  ;;  %vm626_vm14 = vcmp.gt.f32.partialorder %v584_v40, 0.5  ;;  %v585_v8 = vld [vmem:[#allocation2 + $0x80] sm:$0xff]  ;;  %v800_v24 = vmul.f32 0.5, %v674_v14 }
 0x1e2   : > { %v566_v16 = vpop.f32.mrb[42].mxu0  ;;  %vm1968_vm2 = vmand %vm624_vm11, %vm708_vm12  ;;  %vm712_vm11 = vcmp.gt.f32.partialorder %v670_v58, 0.5  ;;  %v590_v13 = vld [vmem:[#allocation2 + $0xa8] sm:$0xff]  ;;  %v829_v28 = vpack.c.bf16 %v797_v19, %v795_v18  ;;  %v799_v40 = vmul.f32 0.5, %v673_v27  ;;  %v806_v45 = vmul.f32 0.5, %v680_v37 }
 0x1e3   : > { %v932_v20 = vand.u32 %v897_v12, %v1885_v34  ;;  %v567_v21 = vpop.f32.mrb[43].mxu0  ;;  %v868_v34 = vsel %vm846_vm9, %v824_v17, 0  ;;  %vm621_vm9 = vcmp.gt.f32.partialorder %v579_v33, 0.5  ;;  %v867_v44 = vsel %vm845_vm5, %v823_v36, 0  ;;  %vm1972_vm3 = vmand %vm626_vm14, %vm710_vm15  ;;  %v592_v16 = vld [vmem:[#allocation2 + $0xb8] sm:$0xff]  ;;  %v676_v17 = vld [vmem:[#allocation5 + $0xb8] sm:$0xff] }
 0x1e4   : > { %vm1964_vm1 = vmand %vm621_vm9, %vm705_vm10  ;;  %vm623_vm5 = vcmp.gt.f32.partialorder %v581_v51, 0.5  ;;  %vm709_vm9 = vcmp.gt.f32.partialorder %v667_v56, 0.5  ;;  %vm628_vm10 = vcmp.gt.f32.partialorder %v586_v57, 0.5  ;;  %vm714_vm14 = vcmp.gt.f32.partialorder %v672_v61, 0.5  ;;  %v678_v33 = vld [vmem:[#allocation5 + $0xc8] sm:$0xff]  ;;  %v679_v51 = vld [vmem:[#allocation5 + $0xd0] sm:$0xff] }
 0x1e5   : > { %955 = vmatpush1.bf16.msra.mxu1 %v932_v20  ;;  %vm847_vm4 = vmpackc.low %vm1964_vm1, %vm1960_vm13  ;;  %vm630_vm13 = vcmp.gt.f32.partialorder %v588_v60, 0.5  ;;  %v827_v12 = vpack.c.bf16 %v793_v2, %v791_v1  ;;  %v802_v25 = vmul.f32 0.5, %v676_v17  ;;  %v596_v36 = vld [vmem:[#allocation2 + $0xd8] sm:$0xff]  ;;  %v831_v52 = vpack.c.bf16 %v801_v41, %v799_v40  ;;  %v684_v57 = vld [vmem:[#allocation5 + $0xf8] sm:$0xff] }
 0x1e6   : > { %vm850_vm7 = vmpackc.low %vm1972_vm3, %vm1968_vm2  ;;  %v869_v62 = vsel %vm847_vm4, %v825_v53, 0  ;;  %vm627_vm4 = vcmp.gt.f32.partialorder %v585_v8, 0.5  ;;  %v598_v53 = vld [vmem:[#allocation2 + $0xe8] sm:$0xff]  ;;  %v600_v56 = vld [vmem:[#allocation2 + $0xf8] sm:$0xff]  ;;  %v803_v58 = vmul.f32 0.5, %v677_v48  ;;  %v808_v1 = vmul.f32 0.5, %v682_v54 }
 0x1e7   : > { %vm1985_vm12 = vmand %vm623_vm5, %vm707_vm6  ;;  %v872_v3 = vsel %vm850_vm7, %v828_v59, 0  ;;  %vm711_vm5 = vcmp.gt.f32.partialorder %v669_v9, 0.5  ;;  %vm629_vm7 = vcmp.gt.f32.partialorder %v587_v11, 0.5  ;;  %v832_v35 = vpack.c.bf16 %v802_v25, %v800_v24  ;;  %v599_v8 = vld [vmem:[#allocation2 + $0xf0] sm:$0xff]  ;;  %v683_v9 = vld [vmem:[#allocation5 + $0xf0] sm:$0xff] }
 0x1e8   : > { %967 = vmatmul.mubr.bf16.vlgmr.msra.gmra.mrb[0].mxu1 %v865_v22  ;;  %vm1989_vm15 = vmand %vm625_vm8, %vm709_vm9  ;;  %vm713_vm8 = vcmp.gt.f32.partialorder %v671_v0, 0.5  ;;  %vm632_vm9 = vcmp.gt.f32.partialorder %v590_v13, 0.5  ;;  %v805_v59 = vmul.f32 0.5, %v679_v51  ;;  %v810_v2 = vmul.f32 0.5, %v684_v57  ;;  %v686_v11 = vld [vmem:[#allocation5 + $0x108] sm:$0xff]  ;;  %v688_v13 = vld [vmem:[#allocation5 + $0x118] sm:$0xff] }
 0x1e9   : > { %1258 = vmatprep.mubr.msk.bf16.mxu1 %vm409_vm0, %v868_v34  ;;  %vm1993_vm1 = vmand %vm628_vm10, %vm712_vm11  ;;  %vm716_vm10 = vcmp.gt.f32.partialorder %v674_v14, 0.5  ;;  %v814_v21 = vmul.f32 0.5, %v688_v13  ;;  %v685_v24 = vld [vmem:[#allocation5 + $0x100] sm:$0xff]  ;;  %v816_v40 = vmul.f32 0.5, %v690_v29 }
 0x1ea   : > { %vm1997_vm2 = vmand %vm630_vm13, %vm714_vm14  ;;  %vm718_vm13 = vcmp.gt.f32.partialorder %v676_v17, 0.5  ;;  %v833_v6 = vpack.c.bf16 %v805_v59, %v803_v58  ;;  %v836_v0 = vpack.c.bf16 %v810_v2, %v808_v1  ;;  %v809_v17 = vmul.f32 0.5, %v683_v9  ;;  %v603_v34 = vld [vmem:[#allocation2 + $0x110] sm:$0xff]  ;;  %v609_v58 = vld [vmem:[#allocation2 + $0x140] sm:$0x1] }
 0x1eb   : > { %vm849_vm3 = vmpackc.low %vm1989_vm15, %vm1985_vm12  ;;  %vm634_vm12 = vcmp.gt.f32.partialorder %v592_v16, 0.5  ;;  %v807_v16 = vmul.f32 0.5, %v681_v5  ;;  %v693_v59 = vld [vmem:[#allocation5 + $0x140] sm:$0x1] }
 0x1ec   : > { %vm852_vm6 = vmpackc.low %vm1997_vm2, %vm1993_vm1  ;;  %v871_v20 = vsel %vm849_vm3, %v827_v12, 0  ;;  %vm631_vm3 = vcmp.gt.f32.partialorder %v589_v26, 0.5  ;;  %v604_v12 = vld [vmem:[#allocation2 + $0x118] sm:$0xff]  ;;  %v687_v26 = vld [vmem:[#allocation5 + $0x110] sm:$0xff] }
 0x1ed   : > { %vm2010_vm11 = vmand %vm627_vm4, %vm711_vm5  ;;  %v874_v22 = vsel %vm852_vm6, %v830_v15, 0  ;;  %vm715_vm4 = vcmp.gt.f32.partialorder %v673_v27, 0.5  ;;  %vm633_vm6 = vcmp.gt.f32.partialorder %v591_v30, 0.5  ;;  %v835_v27 = vpack.c.bf16 %v809_v17, %v807_v16  ;;  %v1393_v15 = vld [vmem:[%s1845_s7 + $0x18] sm:$0xff]  ;;  %v1394_v19 = vld [vmem:[%s1845_s7 + $0x20] sm:$0xff] }
 0x1ee   : > { %vm2014_vm14 = vmand %vm629_vm7, %vm713_vm8  ;;  %vm717_vm7 = vcmp.gt.f32.partialorder %v675_v31, 0.5  ;;  %vm636_vm8 = vcmp.gt.f32.partialorder %v594_v32, 0.5  ;;  %v608_v31 = vld [vmem:[#allocation2 + $0x138] sm:$0xff]  ;;  %v692_v32 = vld [vmem:[#allocation5 + $0x138] sm:$0xff] }
 0x1ef   : > { %vm2018_vm15 = vmand %vm632_vm9, %vm716_vm10  ;;  %vm720_vm9 = vcmp.gt.f32.partialorder %v678_v33, 0.5  ;;  %v818_v41 = vmul.f32 0.5, %v692_v32 }
 0x1f0   : > { %975 = vmatmul.mubr.bf16.gmra.mrb[4].mxu1 %v867_v44  ;;  %vm2022_vm1 = vmand %vm634_vm12, %vm718_vm13  ;;  %vm722_vm12 = vcmp.gt.f32.partialorder %v680_v37, 0.5  ;;  %v804_v44 = vmul.f32 0.5, %v678_v33  ;;  %v811_v33 = vmul.f32 0.5, %v685_v24 }
 0x1f1   : > { %1259 = vmatprep.mubr.msk.bf16.mxu1 %vm409_vm0, %v870_v46  ;;  %vm851_vm2 = vmpackc.low %vm2014_vm14, %vm2010_vm11  ;;  %vm638_vm11 = vcmp.gt.f32.partialorder %v596_v36, 0.5  ;;  %v689_v46 = vld [vmem:[#allocation5 + $0x120] sm:$0xff]  ;;  %v840_v49 = vpack.c.bf16 %v818_v41, %v816_v40 }
 0x1f2   : > { %vm854_vm5 = vmpackc.low %vm2022_vm1, %vm2018_vm15  ;;  %v873_v38 = vsel %vm851_vm2, %v829_v28, 0  ;;  %v834_v55 = vpack.c.bf16 %v806_v45, %v804_v44  ;;  %vm635_vm2 = vcmp.gt.f32.partialorder %v593_v47, 0.5  ;;  %v606_v28 = vld [vmem:[#allocation2 + $0x128] sm:$0xff]  ;;  %v605_v45 = vld [vmem:[#allocation2 + $0x120] sm:$0xff] }
 0x1f3   : > { %vm2035_vm10 = vmand %vm631_vm3, %vm715_vm4  ;;  %v876_v42 = vsel %vm854_vm5, %v832_v35, 0  ;;  %vm719_vm3 = vcmp.gt.f32.partialorder %v677_v48, 0.5  ;;  %vm637_vm5 = vcmp.gt.f32.partialorder %v595_v50, 0.5  ;;  %v813_v35 = vmul.f32 0.5, %v687_v26  ;;  %v607_v47 = vld [vmem:[#allocation2 + $0x130] sm:$0xff]  ;;  %v691_v48 = vld [vmem:[#allocation5 + $0x130] sm:$0xff] }
 0x1f4   : > { %vm2039_vm13 = vmand %vm633_vm6, %vm717_vm7  ;;  %vm721_vm6 = vcmp.gt.f32.partialorder %v679_v51, 0.5  ;;  %vm640_vm7 = vcmp.gt.f32.partialorder %v598_v53, 0.5  ;;  %v610_v50 = vld [vmem:[#allocation2 + $0x148] sm:$0x1]  ;;  %v694_v51 = vld [vmem:[#allocation5 + $0x148] sm:$0x1] }
 0x1f5   : > { %vm2043_vm14 = vmand %vm636_vm8, %vm720_vm9  ;;  %vm724_vm8 = vcmp.gt.f32.partialorder %v682_v54, 0.5  ;;  %v837_v43 = vpack.c.bf16 %v813_v35, %v811_v33  ;;  %v815_v53 = vmul.f32 0.5, %v689_v46  ;;  %v817_v54 = vmul.f32 0.5, %v691_v48  ;;  %v1398_v35 = vld [vmem:[%s1845_s7 + $0x40] sm:$0xff] }
 0x1f6   : > { %vm2047_vm15 = vmand %vm638_vm11, %vm722_vm12  ;;  %vm726_vm11 = vcmp.gt.f32.partialorder %v684_v57, 0.5 }
 0x1f7   : > { %vm853_vm1 = vmpackc.low %vm2039_vm13, %vm2035_vm10  ;;  %vm642_vm10 = vcmp.gt.f32.partialorder %v600_v56, 0.5  ;;  %v820_v56 = vmul.f32 0.5, %v694_v51  ;;  %v839_v57 = vpack.c.bf16 %v817_v54, %v815_v53 }
 0x1f8   : > { %983 = vmatmul.mubr.bf16.gmra.mrb[8].mxu1 %v869_v62  ;;  %vm856_vm4 = vmpackc.low %vm2047_vm15, %vm2043_vm14  ;;  %v875_v60 = vsel %vm853_vm1, %v831_v52, 0  ;;  %vm639_vm1 = vcmp.gt.f32.partialorder %v597_v4, 0.5  ;;  %v1390_v4 = vld [vmem:[%s1845_s7] sm:$0xff] }
 0x1f9   : > { %1260 = vmatprep.mubr.msk.bf16.mxu1 %vm409_vm0, %v872_v3  ;;  %vm2060_vm9 = vmand %vm635_vm2, %vm719_vm3  ;;  %v878_v62 = vsel %vm856_vm4, %v834_v55, 0  ;;  %vm723_vm2 = vcmp.gt.f32.partialorder %v681_v5, 0.5  ;;  %vm641_vm4 = vcmp.gt.f32.partialorder %v599_v8, 0.5  ;;  %v1391_v8 = vld [vmem:[%s1845_s7 + $0x8] sm:$0xff] }
 0x1fa   : > { %vm2064_vm12 = vmand %vm637_vm5, %vm721_vm6  ;;  %vm725_vm5 = vcmp.gt.f32.partialorder %v683_v9, 0.5  ;;  %vm644_vm6 = vcmp.gt.f32.partialorder %v602_v10, 0.5 }
 0x1fb   : > { %vm2068_vm13 = vmand %vm640_vm7, %vm724_vm8  ;;  %vm728_vm7 = vcmp.gt.f32.partialorder %v686_v11, 0.5 }
 0x1fc   : > { %vm2072_vm14 = vmand %vm642_vm10, %vm726_vm11  ;;  %vm730_vm10 = vcmp.gt.f32.partialorder %v688_v13, 0.5 }
 0x1fd   : > { %vm855_vm15 = vmpackc.low %vm2064_vm12, %vm2060_vm9  ;;  %vm646_vm9 = vcmp.gt.f32.partialorder %v604_v12, 0.5 }
 0x1fe   : > { %vm858_vm3 = vmpackc.low %vm2072_vm14, %vm2068_vm13  ;;  %v877_v14 = vsel %vm855_vm15, %v833_v6, 0  ;;  %vm643_vm15 = vcmp.gt.f32.partialorder %v601_v23, 0.5  ;;  %v1395_v23 = vld [vmem:[%s1845_s7 + $0x28] sm:$0xff] }
 0x1ff   : > { %vm2085_vm8 = vmand %vm639_vm1, %vm723_vm2  ;;  %v880_v18 = vsel %vm858_vm3, %v836_v0, 0  ;;  %vm727_vm1 = vcmp.gt.f32.partialorder %v685_v24, 0.5  ;;  %vm645_vm3 = vcmp.gt.f32.partialorder %v603_v34, 0.5  ;;  %v1392_v0 = vld [vmem:[%s1845_s7 + $0x10] sm:$0xff] }
 0x200   : > { %991 = vmatmul.mubr.bf16.gmra.mrb[12].mxu1 %v871_v20  ;;  %vm2089_vm11 = vmand %vm641_vm4, %vm725_vm5  ;;  %v812_v20 = vmul.f32 0.5, %v686_v11  ;;  %vm729_vm4 = vcmp.gt.f32.partialorder %v687_v26, 0.5  ;;  %vm648_vm5 = vcmp.gt.f32.partialorder %v606_v28, 0.5  ;;  %v1396_v26 = vld [vmem:[%s1845_s7 + $0x30] sm:$0xff] }
 0x201   : > { %1261 = vmatprep.mubr.msk.bf16.mxu1 %vm409_vm0, %v874_v22  ;;  %vm2093_vm12 = vmand %vm644_vm6, %vm728_vm7  ;;  %vm732_vm6 = vcmp.gt.f32.partialorder %v690_v29, 0.5 }
 0x202   : > { %vm2097_vm13 = vmand %vm646_vm9, %vm730_vm10  ;;  %v838_v30 = vpack.c.bf16 %v814_v21, %v812_v20  ;;  %vm734_vm9 = vcmp.gt.f32.partialorder %v692_v32, 0.5 }
 0x203   : > { %vm857_vm14 = vmpackc.low %vm2089_vm11, %vm2085_vm8  ;;  %vm650_vm8 = vcmp.gt.f32.partialorder %v608_v31, 0.5 }
 0x204   : > { %vm860_vm2 = vmpackc.low %vm2097_vm13, %vm2093_vm12  ;;  %v879_v36 = vsel %vm857_vm14, %v835_v27, 0 }
 0x205   : > { %vm2110_vm7 = vmand %vm643_vm15, %vm727_vm1  ;;  %vm647_vm15 = vcmp.gt.f32.partialorder %v605_v45, 0.5  ;;  %vm731_vm1 = vcmp.gt.f32.partialorder %v689_v46, 0.5 }
 0x206   : > { %vm2114_vm10 = vmand %vm645_vm3, %vm729_vm4  ;;  %vm733_vm3 = vcmp.gt.f32.partialorder %v691_v48, 0.5  ;;  %vm652_vm4 = vcmp.gt.f32.partialorder %v610_v50, 0.5 }
 0x207   : > { %vm2118_vm11 = vmand %vm648_vm5, %vm732_vm6  ;;  %vm736_vm5 = vcmp.gt.f32.partialorder %v694_v51, 0.5  ;;  %v1402_v51 = vld [vmem:[%s1845_s7 + $0x60] sm:$0xff] }
 0x208   : > { %999 = vmatmul.mubr.bf16.gmra.mrb[16].mxu1 %v873_v38  ;;  %v882_v38 = vsel %vm860_vm2, %v838_v30, 0  ;;  %vm2122_vm12 = vmand %vm650_vm8, %vm734_vm9  ;;  %vm649_vm2 = vcmp.gt.f32.partialorder %v607_v47, 0.5  ;;  %v1397_v30 = vld [vmem:[%s1845_s7 + $0x38] sm:$0xff] }
 0x209   : > { %1262 = vmatprep.mubr.msk.bf16.mxu1 %vm409_vm0, %v876_v42  ;;  %vm859_vm13 = vmpackc.low %vm2114_vm10, %vm2110_vm7  ;;  %v1401_v47 = vld [vmem:[%s1845_s7 + $0x58] sm:$0xff] }
 0x20a   : > { %vm862_vm14 = vmpackc.low %vm2122_vm12, %vm2118_vm11  ;;  %v881_v52 = vsel %vm859_vm13, %v837_v43, 0  ;;  %vm651_vm11 = vcmp.gt.f32.partialorder %v609_v58, 0.5  ;;  %vm735_vm12 = vcmp.gt.f32.partialorder %v693_v59, 0.5  ;;  %v1400_v43 = vld [vmem:[%s1845_s7 + $0x50] sm:$0xff] }
 0x20b   : > { %v884_v55 = vsel %vm862_vm14, %v840_v49, 0  ;;  %vm773_vm6 = vmand %vm647_vm15, %vm731_vm1 }
 0x20c   : > { %vm775_vm7 = vmand %vm649_vm2, %vm733_vm3 }
 0x20d   : > { %vm778_vm8 = vmand %vm652_vm4, %vm736_vm5 }
 0x20e   : > { %vm861_vm9 = vmpackc.low %vm775_vm7, %vm773_vm6 }
 0x20f   : > { %vm864_vm10 = vmpackc.low %vm778_vm8, %vm778_vm8  ;;  %v883_v61 = vsel %vm861_vm9, %v839_v57, 0 }
 0x210   : > { %1007 = vmatmul.mubr.bf16.gmra.mrb[20].mxu1 %v875_v60  ;;  %v842_v60 = vpack.c.bf16 %v820_v56, %v820_v56  ;;  %vm777_vm13 = vmand %vm651_vm11, %vm735_vm12 }
 0x211   : > { %1263 = vmatprep.mubr.msk.bf16.mxu1 %vm409_vm0, %v878_v62  ;;  %v819_v62 = vmul.f32 0.5, %v693_v59  ;;  %vm863_vm14 = vmpackc.low %vm777_vm13, %vm777_vm13  ;;  %v1404_v59 = vld [vmem:[%s1845_s7 + $0x70] sm:$0xff] }
 0x212   : > { %v886_v63 = vsel %vm864_vm10, %v842_v60, 0 }
 0x213   : > { %v841_v1 = vpack.c.bf16 %v819_v62, %v819_v62 }
 0x215   : > { %v885_v2 = vsel %vm863_vm14, %v841_v1, 0 }
 0x218   : > { %1015 = vmatmul.mubr.bf16.gmra.mrb[24].mxu1 %v877_v14 }
 0x219   : > { %1264 = vmatprep.mubr.msk.bf16.mxu1 %vm409_vm0, %v880_v18 }
 0x220   : > { %1023 = vmatmul.mubr.bf16.gmra.mrb[28].mxu1 %v879_v36 }
 0x221   : > { %1265 = vmatprep.mubr.msk.bf16.mxu1 %vm409_vm0, %v882_v38 }
 0x228   : > { %1031 = vmatmul.mubr.bf16.gmra.mrb[32].mxu1 %v881_v52 }
 0x229   : > { %1266 = vmatprep.mubr.msk.bf16.mxu1 %vm409_vm0, %v884_v55  ;;  %v1403_v55 = vld [vmem:[%s1845_s7 + $0x68] sm:$0xff] }
 0x230   : > { %1039 = vmatmul.mubr.bf16.gmra.mrb[36].mxu1 %v883_v61 }
 0x231   : > { %1267 = vmatprep.mubr.msk.bf16.mxu1 %vm409_vm0, %v886_v63  ;;  %v1405_v63 = vld [vmem:[%s1845_s7 + $0x78] sm:$0xff] }
 0x238   : > { %1047 = vmatmul.mubr.bf16.gmra.mrb[40].mxu1 %v885_v2 }
 0x2bb   : > { %v968_v3 = vpop.f32.mrb[0].mxu1 }
 0x2bc   : > { %v1054_v5 = vadd.f32 %v1390_v4, %v968_v3  ;;  %v970_v6 = vpop.f32.mrb[1].mxu1  ;;  %v1406_v4 = vld [vmem:[%s1845_s7 + $0x80] sm:$0xff] }
 0x2bd   : > { %v971_v7 = vpop.f32.mrb[2].mxu1 }
 0x2be   : > { %1075 = vst [vmem:[%s2140_s26] sm:$0xff] %v1054_v5  ;;  %v1055_v9 = vadd.f32 %v1391_v8, %v971_v7  ;;  %v973_v10 = vpop.f32.mrb[3].mxu1  ;;  %v1407_v8 = vld [vmem:[%s1845_s7 + $0x88] sm:$0xff] }
 0x2c0   : > { %1076 = vst [vmem:[%s2140_s26 + $0x8] sm:$0xff] %v1055_v9 }
 0x2c3   : > { %v976_v11 = vpop.f32.mrb[4].mxu1 }
 0x2c4   : > { %v1056_v12 = vadd.f32 %v1392_v0, %v976_v11  ;;  %v978_v13 = vpop.f32.mrb[5].mxu1  ;;  %v1408_v0 = vld [vmem:[%s1845_s7 + $0x90] sm:$0xff] }
 0x2c5   : > { %v979_v14 = vpop.f32.mrb[6].mxu1 }
 0x2c6   : > { %1077 = vst [vmem:[%s2140_s26 + $0x10] sm:$0xff] %v1056_v12  ;;  %v1057_v16 = vadd.f32 %v1393_v15, %v979_v14  ;;  %v981_v17 = vpop.f32.mrb[7].mxu1  ;;  %v1409_v15 = vld [vmem:[%s1845_s7 + $0x98] sm:$0xff] }
 0x2c8   : > { %1078 = vst [vmem:[%s2140_s26 + $0x18] sm:$0xff] %v1057_v16 }
 0x2cb   : > { %v984_v18 = vpop.f32.mrb[8].mxu1 }
 0x2cc   : > { %v1058_v20 = vadd.f32 %v1394_v19, %v984_v18  ;;  %v986_v21 = vpop.f32.mrb[9].mxu1  ;;  %v1410_v19 = vld [vmem:[%s1845_s7 + $0xa0] sm:$0x1] }
 0x2cd   : > { %v987_v22 = vpop.f32.mrb[10].mxu1 }
 0x2ce   : > { %1079 = vst [vmem:[%s2140_s26 + $0x20] sm:$0xff] %v1058_v20  ;;  %v1059_v24 = vadd.f32 %v1395_v23, %v987_v22  ;;  %v989_v25 = vpop.f32.mrb[11].mxu1 }
 0x2d0   : > { %1080 = vst [vmem:[%s2140_s26 + $0x28] sm:$0xff] %v1059_v24 }
 0x2d3   : > { %v992_v34 = vpop.f32.mrb[12].mxu1 }
 0x2d4   : > { %v1060_v27 = vadd.f32 %v1396_v26, %v992_v34  ;;  %v994_v28 = vpop.f32.mrb[13].mxu1 }
 0x2d5   : > { %v995_v29 = vpop.f32.mrb[14].mxu1 }
 0x2d6   : > { %1081 = vst [vmem:[%s2140_s26 + $0x30] sm:$0xff] %v1060_v27  ;;  %v1061_v31 = vadd.f32 %v1397_v30, %v995_v29  ;;  %v997_v32 = vpop.f32.mrb[15].mxu1 }
 0x2d8   : > { %1082 = vst [vmem:[%s2140_s26 + $0x38] sm:$0xff] %v1061_v31 }
 0x2db   : > { %v1000_v33 = vpop.f32.mrb[16].mxu1 }
 0x2dc   : > { %v1062_v36 = vadd.f32 %v1398_v35, %v1000_v33  ;;  %v1002_v37 = vpop.f32.mrb[17].mxu1 }
 0x2dd   : > { %v1003_v38 = vpop.f32.mrb[18].mxu1 }
 0x2de   : > { %1083 = vst [vmem:[%s2140_s26 + $0x40] sm:$0xff] %v1062_v36  ;;  %v1063_v40 = vadd.f32 %v1399_v39, %v1003_v38  ;;  %v1005_v41 = vpop.f32.mrb[19].mxu1 }
 0x2e0   : > { %1084 = vst [vmem:[%s2140_s26 + $0x48] sm:$0xff] %v1063_v40 }
 0x2e3   : > { %v1008_v42 = vpop.f32.mrb[20].mxu1 }
 0x2e4   : > { %v1064_v44 = vadd.f32 %v1400_v43, %v1008_v42  ;;  %v1010_v45 = vpop.f32.mrb[21].mxu1 }
 0x2e5   : > { %v1011_v46 = vpop.f32.mrb[22].mxu1 }
 0x2e6   : > { %1085 = vst [vmem:[%s2140_s26 + $0x50] sm:$0xff] %v1064_v44  ;;  %v1065_v48 = vadd.f32 %v1401_v47, %v1011_v46  ;;  %v1013_v49 = vpop.f32.mrb[23].mxu1 }
 0x2e8   : > { %1086 = vst [vmem:[%s2140_s26 + $0x58] sm:$0xff] %v1065_v48 }
 0x2eb   : > { %v1016_v50 = vpop.f32.mrb[24].mxu1 }
 0x2ec   : > { %v1066_v52 = vadd.f32 %v1402_v51, %v1016_v50  ;;  %v1018_v53 = vpop.f32.mrb[25].mxu1 }
 0x2ed   : > { %v1019_v54 = vpop.f32.mrb[26].mxu1 }
 0x2ee   : > { %1087 = vst [vmem:[%s2140_s26 + $0x60] sm:$0xff] %v1066_v52  ;;  %v1067_v56 = vadd.f32 %v1403_v55, %v1019_v54  ;;  %v1021_v57 = vpop.f32.mrb[27].mxu1 }
 0x2f0   : > { %1088 = vst [vmem:[%s2140_s26 + $0x68] sm:$0xff] %v1067_v56 }
 0x2f3   : > { %v1024_v58 = vpop.f32.mrb[28].mxu1 }
 0x2f4   : > { %v1068_v60 = vadd.f32 %v1404_v59, %v1024_v58  ;;  %v1026_v61 = vpop.f32.mrb[29].mxu1 }
 0x2f5   : > { %v1027_v62 = vpop.f32.mrb[30].mxu1 }
 0x2f6   : > { %1089 = vst [vmem:[%s2140_s26 + $0x70] sm:$0xff] %v1068_v60  ;;  %v1069_v1 = vadd.f32 %v1405_v63, %v1027_v62  ;;  %v1029_v2 = vpop.f32.mrb[31].mxu1 }
 0x2f8   : > { %1090 = vst [vmem:[%s2140_s26 + $0x78] sm:$0xff] %v1069_v1 }
 0x2fb   : > { %v1032_v3 = vpop.f32.mrb[32].mxu1 }
 0x2fc   : > { %v1070_v5 = vadd.f32 %v1406_v4, %v1032_v3  ;;  %v1034_v6 = vpop.f32.mrb[33].mxu1 }
 0x2fd   : > { %v1035_v7 = vpop.f32.mrb[34].mxu1 }
 0x2fe   : > { %1091 = vst [vmem:[%s2140_s26 + $0x80] sm:$0xff] %v1070_v5  ;;  %v1071_v9 = vadd.f32 %v1407_v8, %v1035_v7  ;;  %v1037_v10 = vpop.f32.mrb[35].mxu1 }
 0x300   : > { %1092 = vst [vmem:[%s2140_s26 + $0x88] sm:$0xff] %v1071_v9 }
 0x303   : > { %v1040_v11 = vpop.f32.mrb[36].mxu1 }
 0x304   : > { %v1072_v12 = vadd.f32 %v1408_v0, %v1040_v11  ;;  %v1042_v13 = vpop.f32.mrb[37].mxu1 }
 0x305   : > { %v1043_v14 = vpop.f32.mrb[38].mxu1 }
 0x306   : > { %1093 = vst [vmem:[%s2140_s26 + $0x90] sm:$0xff] %v1072_v12  ;;  %v1073_v16 = vadd.f32 %v1409_v15, %v1043_v14  ;;  %v1045_v17 = vpop.f32.mrb[39].mxu1 }
 0x308   : > { %1094 = vst [vmem:[%s2140_s26 + $0x98] sm:$0xff] %v1073_v16 }
 0x30b   : > { %v1048_v18 = vpop.f32.mrb[40].mxu1 }
 0x30c   : > { %v1074_v20 = vadd.f32 %v1410_v19, %v1048_v18  ;;  %v1050_v21 = vpop.f32.mrb[41].mxu1 }
 0x30d   : > { %v1051_v22 = vpop.f32.mrb[42].mxu1 }
 0x30e   : > { %1095 = vst [vmem:[%s2140_s26 + $0xa0] sm:$0x1] %v1074_v20  ;;  %v1052_v23 = vpop.f32.mrb[43].mxu1 }
 0x30f   : > { %1538 = shalt.err (!%p1535_p13)
}
 0x310   : > { %s1539_s22 = scalar_lea.hbm %s2186_s8, 2688  ;;  %s1543_s23 = scalar_lea.hbm %s2238_s4, 5376 }
 0x311   : > { %p1540_p3 = scmp.ne.s32.totalorder %s2186_s8, %s1539_s22  ;;  %p1544_p8 = scmp.lt.u32.totalorder %s2186_s8, %s2238_s4 }
 0x312   : > { %p1545_p9 = scmp.lt.u32.totalorder %s1543_s23, %s1539_s22  ;;  %p1547_p10 = scmp.lt.u32.totalorder %s1539_s22, %s2186_s8 }
 0x313   : > { %p1541_p11 = pnand %p1540_p3, %p2336_p1 }
 0x314   : > { %p1546_p7 = por %p1545_p9, %p1544_p8 }
 0x315   : > { %p1542_p0 = pneg %p1541_p11 }
 0x316   : > { %p1548_p2 = por %p1547_p10, %p1546_p7 }
 0x318   : > { %p1549_p4 = pnand %p1548_p2, %p1542_p0 }
 0x31a   : > { %1552 = shalt.err (!%p1549_p4)
}
 0x31b   : > { %s1611_s30 = smov 128   ;;  %s1612_s7 = smov 256  }
 0x31c   : > { %s1613_s26 = smov 8  }
 0x31d   : > { %1287 = dma.vmem_to_hbm [thread:$0]  (%p2336_p1), %s2188_s9, 2688, %s2186_s8, %s1097_s19, %s1611_s30, %s1612_s7, %s1613_s26  }
 0x31e PF: > { %s1124_s1 = sand.u32 1, %s1587_s15   ;;  %p2337_p6 = scmp.ne.s32.totalorder %s2249_s28, 0 }
 0x31f   : > { %p2338_p5 = scmp.ge.s32.totalorder %s1599_s18, 2  ;;  %s1125_s5 = scalar_lea.sflag [#allocation4], %s1124_s1 }
 0x321   : > { %p1304_p12 = pnand %p2338_p5, %p2337_p6 }
 0x323   : > { %1582 = dma.done.wait (!%p1304_p12), %s1125_s5, 2688  }
 0x324   : > { %1584 = vsyncadd (!%p1304_p12), %s1125_s5, 4294964608  ;;  %s2339_s25 = sld [smem:[#allocation15_spill]]  ;;  %p19_p13 = scmp.ge.s32.totalorder %s1664_s21, 4  }
 0x325   : > { %s2340_s15 = smov %s1591_s16  ;;  %s2341_s16 = smov %s1595_s17 }
 0x326   : > { %s2343_s18 = smov %s1664_s21  ;;  %21 = sbr.rel (!%p19_p13) target bundleno = 9 (0x9), region = 94 }
 0x32a   : > { %s2342_s17 = smov %s2339_s25 }
 0x32d   :  { %1130 = vsyncpa [#allocation3], 1 }
 0x32e   :  { %1132 = vsyncpa [#allocation3 + $0x1], 1 }
 0x32f   :  { %1133 = vsyncpa [#allocation6], 1 }
 0x330   :  { %1134 = vsyncpa [#allocation9], 1 }
 0x331   :  { %1136 = vsyncpa [#allocation9 + $0x1], 1 }
 0x332   :  { %1137 = vsyncpa [#allocation4], 1 }
 0x333   :  { %1139 = vsyncpa [#allocation4 + $0x1], 1 }

</bundles_post_ra>
